<compile_context>
chip_gen: v6e
topology: v6e:2x2x1
jax: 0.10.0
libtpu: 0.0.40
codegen_flags: <defaults>
</compile_context>

<pallas_src>
import jax
import jax.numpy as jnp
from jax.experimental import pallas as pl
from jax.experimental.pallas import tpu as pltpu


def _lstm_last_fc_kernel(x_ref, w_ih_ref, w_hh_ref, b_ref, w_fc_ref, b_fc_ref,
                         out_ref, *, seq_len, batch, hidden):
    T, B, H = seq_len, batch, hidden

    # --- Hoisted input projection: one batched MXU matmul for all timesteps. ---
    # x_ref: (T*B, I) time-major.  x_proj: (T*B, 4H), lane-dense when 4H % 128 == 0.
    x_proj = (jnp.dot(x_ref[...], w_ih_ref[...],
                      preferred_element_type=jnp.float32)
              + b_ref[...])                                   # (T*B, 4H)

    w_hh = w_hh_ref[...]                                      # (H, 4H), loop-invariant

    h = jnp.zeros((B, H), jnp.float32)
    c = jnp.zeros((B, H), jnp.float32)

    # --- Sequential recurrence, fully unrolled (T is small and static). ---
    for t in range(T):
        gates = x_proj[t * B:(t + 1) * B, :] + jnp.dot(
            h, w_hh, preferred_element_type=jnp.float32)      # (B, 4H)

        # Full-tile activations (one EUP sigmoid + one tanh on the (B,128) tile),
        # then static lane slices for the individual gates.
        sig = jax.nn.sigmoid(gates)
        tnh = jnp.tanh(gates)
        i_g = sig[:, 0 * H:1 * H]
        f_g = sig[:, 1 * H:2 * H]
        g_g = tnh[:, 2 * H:3 * H]
        o_g = sig[:, 3 * H:4 * H]

        c = f_g * c + i_g * g_g
        h = o_g * jnp.tanh(c)

    # --- Fused final Linear on h_T. ---
    out_ref[...] = (jnp.dot(h, w_fc_ref[...], preferred_element_type=jnp.float32)
                    + b_fc_ref[...]).astype(out_ref.dtype)


def lstm_model_forward(x, w_ih, w_hh, b_ih, b_hh, w_fc, b_fc):
    """Pallas TPU implementation of LSTMModel.forward (num_layers=1).

    x:    (B, T, I)  float32, batch_first like PyTorch
    w_ih: (4H, I)    w_hh: (4H, H)    b_ih/b_hh: (4H,)   [PyTorch gate order i,f,g,o]
    w_fc: (O, H)     b_fc: (O,)
    Returns (B, O).
    """
    B, T, I = x.shape
    H = w_hh.shape[1]
    O = w_fc.shape[0]

    # Time-major, flattened to (T*B, I) so the per-step slice inside the kernel
    # is a contiguous, sublane-aligned block.  (The transpose is negligible at
    # these sizes; the hot work is all inside the single kernel invocation.)
    x_tb = jnp.transpose(x, (1, 0, 2)).reshape(T * B, I).astype(jnp.float32)
    w_ih_t = jnp.transpose(w_ih).astype(jnp.float32)             # (I, 4H)
    w_hh_t = jnp.transpose(w_hh).astype(jnp.float32)             # (H, 4H)
    b = (b_ih + b_hh).reshape(1, 4 * H).astype(jnp.float32)      # (1, 4H)
    w_fc_t = jnp.transpose(w_fc).astype(jnp.float32)             # (H, O)
    b_fc_2d = b_fc.reshape(1, O).astype(jnp.float32)             # (1, O)

    kernel = lambda *refs: _lstm_last_fc_kernel(*refs, seq_len=T, batch=B, hidden=H)

    return pl.pallas_call(
        kernel,
        out_shape=jax.ShapeDtypeStruct((B, O), jnp.float32),
        # Single invocation (no grid): every operand is a whole-array VMEM block.
        in_specs=[pl.BlockSpec(memory_space=pltpu.MemorySpace.VMEM)] * 6,
        out_specs=pl.BlockSpec(memory_space=pltpu.MemorySpace.VMEM),
    )(x_tb, w_ih_t, w_hh_t, b, w_fc_t, b_fc_2d)


def lstm_model_ref(x, w_ih, w_hh, b_ih, b_hh, w_fc, b_fc):
    """Pure-JAX reference mirroring the PyTorch forward."""
    B, T, I = x.shape
    H = w_hh.shape[1]
    hp = jax.lax.Precision.HIGHEST
    h = jnp.zeros((B, H), jnp.float32)
    c = jnp.zeros((B, H), jnp.float32)
    for t in range(T):
        g = (jnp.dot(x[:, t, :], w_ih.T, precision=hp) + b_ih
             + jnp.dot(h, w_hh.T, precision=hp) + b_hh)
        i_g = jax.nn.sigmoid(g[:, 0 * H:1 * H])
        f_g = jax.nn.sigmoid(g[:, 1 * H:2 * H])
        g_g = jnp.tanh(g[:, 2 * H:3 * H])
        o_g = jax.nn.sigmoid(g[:, 3 * H:4 * H])
        c = f_g * c + i_g * g_g
        h = o_g * jnp.tanh(c)
    return jnp.dot(h, w_fc.T, precision=hp) + b_fc


if __name__ == "__main__":
    key = jax.random.PRNGKey(0)
    ks = jax.random.split(key, 7)

    # Small deterministic shapes: batch=8, seq=8, input=16, hidden=32, output=8.
    B, T, I, H, O = 8, 8, 16, 32, 8
    scale = 1.0 / float(H) ** 0.5

    x = jax.random.normal(ks[0], (B, T, I), dtype=jnp.float32)
    w_ih = jax.random.uniform(ks[1], (4 * H, I), jnp.float32, -scale, scale)
    w_hh = jax.random.uniform(ks[2], (4 * H, H), jnp.float32, -scale, scale)
    b_ih = jax.random.uniform(ks[3], (4 * H,), jnp.float32, -scale, scale)
    b_hh = jax.random.uniform(ks[4], (4 * H,), jnp.float32, -scale, scale)
    w_fc = jax.random.uniform(ks[5], (O, H), jnp.float32, -scale, scale)
    b_fc = jax.random.uniform(ks[6], (O,), jnp.float32, -scale, scale)

    out = lstm_model_forward(x, w_ih, w_hh, b_ih, b_hh, w_fc, b_fc)
    out = jax.block_until_ready(out)

    ref = lstm_model_ref(x, w_ih, w_hh, b_ih, b_hh, w_fc, b_fc)
    assert out.shape == (B, O), out.shape
    assert jnp.allclose(out, ref, rtol=1e-4, atol=1e-4), (out, ref)

    print("KERNEL_OK")
</pallas_src>

<mosaic_0001>
module attributes {stable_mosaic.version = 11 : i64} {
  func.func @_lambda_(%arg0: memref<64x16xf32, #tpu.memory_space<vmem>>, %arg1: memref<16x128xf32, #tpu.memory_space<vmem>>, %arg2: memref<32x128xf32, #tpu.memory_space<vmem>>, %arg3: memref<1x128xf32, #tpu.memory_space<vmem>>, %arg4: memref<32x8xf32, #tpu.memory_space<vmem>>, %arg5: memref<1x8xf32, #tpu.memory_space<vmem>>, %arg6: memref<8x8xf32, #tpu.memory_space<vmem>>) attributes {dimension_semantics = [], scalar_prefetch = 0 : i64, scratch_operands = 0 : i64, tpu.core_type = #tpu.core_type<tc>} {
    %c0 = arith.constant 0 : index
    %c0_0 = arith.constant 0 : index
    %0 = vector.load %arg0[%c0, %c0_0] : memref<64x16xf32, #tpu.memory_space<vmem>>, vector<64x16xf32>
    %c0_1 = arith.constant 0 : index
    %c0_2 = arith.constant 0 : index
    %1 = vector.load %arg1[%c0_1, %c0_2] : memref<16x128xf32, #tpu.memory_space<vmem>>, vector<16x128xf32>
    %cst = arith.constant dense<0.000000e+00> : vector<64x128xf32>
    %2 = tpu.matmul %0, %1, %cst {dimension_numbers = #tpu.dot_dimension_numbers<[1], [0], [0], [1], [0, 0, 1, 1], [], []>} : vector<64x16xf32>, vector<16x128xf32>, vector<64x128xf32> -> vector<64x128xf32>
    %c0_3 = arith.constant 0 : index
    %c0_4 = arith.constant 0 : index
    %3 = vector.load %arg3[%c0_3, %c0_4] : memref<1x128xf32, #tpu.memory_space<vmem>>, vector<1x128xf32>
    %4 = vector.broadcast %3 : vector<1x128xf32> to vector<64x128xf32>
    %5 = arith.addf %2, %4 : vector<64x128xf32>
    %c0_5 = arith.constant 0 : index
    %c0_6 = arith.constant 0 : index
    %6 = vector.load %arg2[%c0_5, %c0_6] : memref<32x128xf32, #tpu.memory_space<vmem>>, vector<32x128xf32>
    %cst_7 = arith.constant 0.000000e+00 : f32
    %7 = vector.broadcast %cst_7 : f32 to vector<8x32xf32>
    %cst_8 = arith.constant 0.000000e+00 : f32
    %8 = vector.broadcast %cst_8 : f32 to vector<8x32xf32>
    %9 = vector.extract_strided_slice %5 {offsets = [0, 0], sizes = [8, 128], strides = [1, 1]} : vector<64x128xf32> to vector<8x128xf32>
    %cst_9 = arith.constant dense<0.000000e+00> : vector<8x128xf32>
    %10 = tpu.matmul %7, %6, %cst_9 {dimension_numbers = #tpu.dot_dimension_numbers<[1], [0], [0], [1], [0, 0, 1, 1], [], []>} : vector<8x32xf32>, vector<32x128xf32>, vector<8x128xf32> -> vector<8x128xf32>
    %11 = arith.addf %9, %10 : vector<8x128xf32>
    %12 = arith.negf %11 : vector<8x128xf32>
    %13 = math.exp %12 : vector<8x128xf32>
    %cst_10 = arith.constant 1.000000e+00 : f32
    %14 = vector.broadcast %cst_10 : f32 to vector<8x128xf32>
    %15 = arith.addf %14, %13 : vector<8x128xf32>
    %16 = arith.divf %14, %15 : vector<8x128xf32>
    %17 = math.tanh %11 : vector<8x128xf32>
    %18 = vector.extract_strided_slice %16 {offsets = [0, 0], sizes = [8, 32], strides = [1, 1]} : vector<8x128xf32> to vector<8x32xf32>
    %19 = vector.extract_strided_slice %16 {offsets = [0, 32], sizes = [8, 32], strides = [1, 1]} : vector<8x128xf32> to vector<8x32xf32>
    %20 = vector.extract_strided_slice %17 {offsets = [0, 64], sizes = [8, 32], strides = [1, 1]} : vector<8x128xf32> to vector<8x32xf32>
    %21 = vector.extract_strided_slice %16 {offsets = [0, 96], sizes = [8, 32], strides = [1, 1]} : vector<8x128xf32> to vector<8x32xf32>
    %22 = arith.mulf %19, %8 : vector<8x32xf32>
    %23 = arith.mulf %18, %20 : vector<8x32xf32>
    %24 = arith.addf %22, %23 : vector<8x32xf32>
    %25 = math.tanh %24 : vector<8x32xf32>
    %26 = arith.mulf %21, %25 : vector<8x32xf32>
    %27 = vector.extract_strided_slice %5 {offsets = [8, 0], sizes = [8, 128], strides = [1, 1]} : vector<64x128xf32> to vector<8x128xf32>
    %cst_11 = arith.constant dense<0.000000e+00> : vector<8x128xf32>
    %28 = tpu.matmul %26, %6, %cst_11 {dimension_numbers = #tpu.dot_dimension_numbers<[1], [0], [0], [1], [0, 0, 1, 1], [], []>} : vector<8x32xf32>, vector<32x128xf32>, vector<8x128xf32> -> vector<8x128xf32>
    %29 = arith.addf %27, %28 : vector<8x128xf32>
    %30 = arith.negf %29 : vector<8x128xf32>
    %31 = math.exp %30 : vector<8x128xf32>
    %cst_12 = arith.constant 1.000000e+00 : f32
    %32 = vector.broadcast %cst_12 : f32 to vector<8x128xf32>
    %33 = arith.addf %32, %31 : vector<8x128xf32>
    %34 = arith.divf %32, %33 : vector<8x128xf32>
    %35 = math.tanh %29 : vector<8x128xf32>
    %36 = vector.extract_strided_slice %34 {offsets = [0, 0], sizes = [8, 32], strides = [1, 1]} : vector<8x128xf32> to vector<8x32xf32>
    %37 = vector.extract_strided_slice %34 {offsets = [0, 32], sizes = [8, 32], strides = [1, 1]} : vector<8x128xf32> to vector<8x32xf32>
    %38 = vector.extract_strided_slice %35 {offsets = [0, 64], sizes = [8, 32], strides = [1, 1]} : vector<8x128xf32> to vector<8x32xf32>
    %39 = vector.extract_strided_slice %34 {offsets = [0, 96], sizes = [8, 32], strides = [1, 1]} : vector<8x128xf32> to vector<8x32xf32>
    %40 = arith.mulf %37, %24 : vector<8x32xf32>
    %41 = arith.mulf %36, %38 : vector<8x32xf32>
    %42 = arith.addf %40, %41 : vector<8x32xf32>
    %43 = math.tanh %42 : vector<8x32xf32>
    %44 = arith.mulf %39, %43 : vector<8x32xf32>
    %45 = vector.extract_strided_slice %5 {offsets = [16, 0], sizes = [8, 128], strides = [1, 1]} : vector<64x128xf32> to vector<8x128xf32>
    %cst_13 = arith.constant dense<0.000000e+00> : vector<8x128xf32>
    %46 = tpu.matmul %44, %6, %cst_13 {dimension_numbers = #tpu.dot_dimension_numbers<[1], [0], [0], [1], [0, 0, 1, 1], [], []>} : vector<8x32xf32>, vector<32x128xf32>, vector<8x128xf32> -> vector<8x128xf32>
    %47 = arith.addf %45, %46 : vector<8x128xf32>
    %48 = arith.negf %47 : vector<8x128xf32>
    %49 = math.exp %48 : vector<8x128xf32>
    %cst_14 = arith.constant 1.000000e+00 : f32
    %50 = vector.broadcast %cst_14 : f32 to vector<8x128xf32>
    %51 = arith.addf %50, %49 : vector<8x128xf32>
    %52 = arith.divf %50, %51 : vector<8x128xf32>
    %53 = math.tanh %47 : vector<8x128xf32>
    %54 = vector.extract_strided_slice %52 {offsets = [0, 0], sizes = [8, 32], strides = [1, 1]} : vector<8x128xf32> to vector<8x32xf32>
    %55 = vector.extract_strided_slice %52 {offsets = [0, 32], sizes = [8, 32], strides = [1, 1]} : vector<8x128xf32> to vector<8x32xf32>
    %56 = vector.extract_strided_slice %53 {offsets = [0, 64], sizes = [8, 32], strides = [1, 1]} : vector<8x128xf32> to vector<8x32xf32>
    %57 = vector.extract_strided_slice %52 {offsets = [0, 96], sizes = [8, 32], strides = [1, 1]} : vector<8x128xf32> to vector<8x32xf32>
    %58 = arith.mulf %55, %42 : vector<8x32xf32>
    %59 = arith.mulf %54, %56 : vector<8x32xf32>
    %60 = arith.addf %58, %59 : vector<8x32xf32>
    %61 = math.tanh %60 : vector<8x32xf32>
    %62 = arith.mulf %57, %61 : vector<8x32xf32>
    %63 = vector.extract_strided_slice %5 {offsets = [24, 0], sizes = [8, 128], strides = [1, 1]} : vector<64x128xf32> to vector<8x128xf32>
    %cst_15 = arith.constant dense<0.000000e+00> : vector<8x128xf32>
    %64 = tpu.matmul %62, %6, %cst_15 {dimension_numbers = #tpu.dot_dimension_numbers<[1], [0], [0], [1], [0, 0, 1, 1], [], []>} : vector<8x32xf32>, vector<32x128xf32>, vector<8x128xf32> -> vector<8x128xf32>
    %65 = arith.addf %63, %64 : vector<8x128xf32>
    %66 = arith.negf %65 : vector<8x128xf32>
    %67 = math.exp %66 : vector<8x128xf32>
    %cst_16 = arith.constant 1.000000e+00 : f32
    %68 = vector.broadcast %cst_16 : f32 to vector<8x128xf32>
    %69 = arith.addf %68, %67 : vector<8x128xf32>
    %70 = arith.divf %68, %69 : vector<8x128xf32>
    %71 = math.tanh %65 : vector<8x128xf32>
    %72 = vector.extract_strided_slice %70 {offsets = [0, 0], sizes = [8, 32], strides = [1, 1]} : vector<8x128xf32> to vector<8x32xf32>
    %73 = vector.extract_strided_slice %70 {offsets = [0, 32], sizes = [8, 32], strides = [1, 1]} : vector<8x128xf32> to vector<8x32xf32>
    %74 = vector.extract_strided_slice %71 {offsets = [0, 64], sizes = [8, 32], strides = [1, 1]} : vector<8x128xf32> to vector<8x32xf32>
    %75 = vector.extract_strided_slice %70 {offsets = [0, 96], sizes = [8, 32], strides = [1, 1]} : vector<8x128xf32> to vector<8x32xf32>
    %76 = arith.mulf %73, %60 : vector<8x32xf32>
    %77 = arith.mulf %72, %74 : vector<8x32xf32>
    %78 = arith.addf %76, %77 : vector<8x32xf32>
    %79 = math.tanh %78 : vector<8x32xf32>
    %80 = arith.mulf %75, %79 : vector<8x32xf32>
    %81 = vector.extract_strided_slice %5 {offsets = [32, 0], sizes = [8, 128], strides = [1, 1]} : vector<64x128xf32> to vector<8x128xf32>
    %cst_17 = arith.constant dense<0.000000e+00> : vector<8x128xf32>
    %82 = tpu.matmul %80, %6, %cst_17 {dimension_numbers = #tpu.dot_dimension_numbers<[1], [0], [0], [1], [0, 0, 1, 1], [], []>} : vector<8x32xf32>, vector<32x128xf32>, vector<8x128xf32> -> vector<8x128xf32>
    %83 = arith.addf %81, %82 : vector<8x128xf32>
    %84 = arith.negf %83 : vector<8x128xf32>
    %85 = math.exp %84 : vector<8x128xf32>
    %cst_18 = arith.constant 1.000000e+00 : f32
    %86 = vector.broadcast %cst_18 : f32 to vector<8x128xf32>
    %87 = arith.addf %86, %85 : vector<8x128xf32>
    %88 = arith.divf %86, %87 : vector<8x128xf32>
    %89 = math.tanh %83 : vector<8x128xf32>
    %90 = vector.extract_strided_slice %88 {offsets = [0, 0], sizes = [8, 32], strides = [1, 1]} : vector<8x128xf32> to vector<8x32xf32>
    %91 = vector.extract_strided_slice %88 {offsets = [0, 32], sizes = [8, 32], strides = [1, 1]} : vector<8x128xf32> to vector<8x32xf32>
    %92 = vector.extract_strided_slice %89 {offsets = [0, 64], sizes = [8, 32], strides = [1, 1]} : vector<8x128xf32> to vector<8x32xf32>
    %93 = vector.extract_strided_slice %88 {offsets = [0, 96], sizes = [8, 32], strides = [1, 1]} : vector<8x128xf32> to vector<8x32xf32>
    %94 = arith.mulf %91, %78 : vector<8x32xf32>
    %95 = arith.mulf %90, %92 : vector<8x32xf32>
    %96 = arith.addf %94, %95 : vector<8x32xf32>
    %97 = math.tanh %96 : vector<8x32xf32>
    %98 = arith.mulf %93, %97 : vector<8x32xf32>
    %99 = vector.extract_strided_slice %5 {offsets = [40, 0], sizes = [8, 128], strides = [1, 1]} : vector<64x128xf32> to vector<8x128xf32>
    %cst_19 = arith.constant dense<0.000000e+00> : vector<8x128xf32>
    %100 = tpu.matmul %98, %6, %cst_19 {dimension_numbers = #tpu.dot_dimension_numbers<[1], [0], [0], [1], [0, 0, 1, 1], [], []>} : vector<8x32xf32>, vector<32x128xf32>, vector<8x128xf32> -> vector<8x128xf32>
    %101 = arith.addf %99, %100 : vector<8x128xf32>
    %102 = arith.negf %101 : vector<8x128xf32>
    %103 = math.exp %102 : vector<8x128xf32>
    %cst_20 = arith.constant 1.000000e+00 : f32
    %104 = vector.broadcast %cst_20 : f32 to vector<8x128xf32>
    %105 = arith.addf %104, %103 : vector<8x128xf32>
    %106 = arith.divf %104, %105 : vector<8x128xf32>
    %107 = math.tanh %101 : vector<8x128xf32>
    %108 = vector.extract_strided_slice %106 {offsets = [0, 0], sizes = [8, 32], strides = [1, 1]} : vector<8x128xf32> to vector<8x32xf32>
    %109 = vector.extract_strided_slice %106 {offsets = [0, 32], sizes = [8, 32], strides = [1, 1]} : vector<8x128xf32> to vector<8x32xf32>
    %110 = vector.extract_strided_slice %107 {offsets = [0, 64], sizes = [8, 32], strides = [1, 1]} : vector<8x128xf32> to vector<8x32xf32>
    %111 = vector.extract_strided_slice %106 {offsets = [0, 96], sizes = [8, 32], strides = [1, 1]} : vector<8x128xf32> to vector<8x32xf32>
    %112 = arith.mulf %109, %96 : vector<8x32xf32>
    %113 = arith.mulf %108, %110 : vector<8x32xf32>
    %114 = arith.addf %112, %113 : vector<8x32xf32>
    %115 = math.tanh %114 : vector<8x32xf32>
    %116 = arith.mulf %111, %115 : vector<8x32xf32>
    %117 = vector.extract_strided_slice %5 {offsets = [48, 0], sizes = [8, 128], strides = [1, 1]} : vector<64x128xf32> to vector<8x128xf32>
    %cst_21 = arith.constant dense<0.000000e+00> : vector<8x128xf32>
    %118 = tpu.matmul %116, %6, %cst_21 {dimension_numbers = #tpu.dot_dimension_numbers<[1], [0], [0], [1], [0, 0, 1, 1], [], []>} : vector<8x32xf32>, vector<32x128xf32>, vector<8x128xf32> -> vector<8x128xf32>
    %119 = arith.addf %117, %118 : vector<8x128xf32>
    %120 = arith.negf %119 : vector<8x128xf32>
    %121 = math.exp %120 : vector<8x128xf32>
    %cst_22 = arith.constant 1.000000e+00 : f32
    %122 = vector.broadcast %cst_22 : f32 to vector<8x128xf32>
    %123 = arith.addf %122, %121 : vector<8x128xf32>
    %124 = arith.divf %122, %123 : vector<8x128xf32>
    %125 = math.tanh %119 : vector<8x128xf32>
    %126 = vector.extract_strided_slice %124 {offsets = [0, 0], sizes = [8, 32], strides = [1, 1]} : vector<8x128xf32> to vector<8x32xf32>
    %127 = vector.extract_strided_slice %124 {offsets = [0, 32], sizes = [8, 32], strides = [1, 1]} : vector<8x128xf32> to vector<8x32xf32>
    %128 = vector.extract_strided_slice %125 {offsets = [0, 64], sizes = [8, 32], strides = [1, 1]} : vector<8x128xf32> to vector<8x32xf32>
    %129 = vector.extract_strided_slice %124 {offsets = [0, 96], sizes = [8, 32], strides = [1, 1]} : vector<8x128xf32> to vector<8x32xf32>
    %130 = arith.mulf %127, %114 : vector<8x32xf32>
    %131 = arith.mulf %126, %128 : vector<8x32xf32>
    %132 = arith.addf %130, %131 : vector<8x32xf32>
    %133 = math.tanh %132 : vector<8x32xf32>
    %134 = arith.mulf %129, %133 : vector<8x32xf32>
    %135 = vector.extract_strided_slice %5 {offsets = [56, 0], sizes = [8, 128], strides = [1, 1]} : vector<64x128xf32> to vector<8x128xf32>
    %cst_23 = arith.constant dense<0.000000e+00> : vector<8x128xf32>
    %136 = tpu.matmul %134, %6, %cst_23 {dimension_numbers = #tpu.dot_dimension_numbers<[1], [0], [0], [1], [0, 0, 1, 1], [], []>} : vector<8x32xf32>, vector<32x128xf32>, vector<8x128xf32> -> vector<8x128xf32>
    %137 = arith.addf %135, %136 : vector<8x128xf32>
    %138 = arith.negf %137 : vector<8x128xf32>
    %139 = math.exp %138 : vector<8x128xf32>
    %cst_24 = arith.constant 1.000000e+00 : f32
    %140 = vector.broadcast %cst_24 : f32 to vector<8x128xf32>
    %141 = arith.addf %140, %139 : vector<8x128xf32>
    %142 = arith.divf %140, %141 : vector<8x128xf32>
    %143 = math.tanh %137 : vector<8x128xf32>
    %144 = vector.extract_strided_slice %142 {offsets = [0, 0], sizes = [8, 32], strides = [1, 1]} : vector<8x128xf32> to vector<8x32xf32>
    %145 = vector.extract_strided_slice %142 {offsets = [0, 32], sizes = [8, 32], strides = [1, 1]} : vector<8x128xf32> to vector<8x32xf32>
    %146 = vector.extract_strided_slice %143 {offsets = [0, 64], sizes = [8, 32], strides = [1, 1]} : vector<8x128xf32> to vector<8x32xf32>
    %147 = vector.extract_strided_slice %142 {offsets = [0, 96], sizes = [8, 32], strides = [1, 1]} : vector<8x128xf32> to vector<8x32xf32>
    %148 = arith.mulf %145, %132 : vector<8x32xf32>
    %149 = arith.mulf %144, %146 : vector<8x32xf32>
    %150 = arith.addf %148, %149 : vector<8x32xf32>
    %151 = math.tanh %150 : vector<8x32xf32>
    %152 = arith.mulf %147, %151 : vector<8x32xf32>
    %c0_25 = arith.constant 0 : index
    %c0_26 = arith.constant 0 : index
    %153 = vector.load %arg4[%c0_25, %c0_26] : memref<32x8xf32, #tpu.memory_space<vmem>>, vector<32x8xf32>
    %cst_27 = arith.constant dense<0.000000e+00> : vector<8x8xf32>
    %154 = tpu.matmul %152, %153, %cst_27 {dimension_numbers = #tpu.dot_dimension_numbers<[1], [0], [0], [1], [0, 0, 1, 1], [], []>} : vector<8x32xf32>, vector<32x8xf32>, vector<8x8xf32> -> vector<8x8xf32>
    %c0_28 = arith.constant 0 : index
    %c0_29 = arith.constant 0 : index
    %155 = vector.load %arg5[%c0_28, %c0_29] : memref<1x8xf32, #tpu.memory_space<vmem>>, vector<1x8xf32>
    %156 = vector.broadcast %155 : vector<1x8xf32> to vector<8x8xf32>
    %157 = arith.addf %154, %156 : vector<8x8xf32>
    %c0_30 = arith.constant 0 : index
    %c0_31 = arith.constant 0 : index
    %158 = vector.load %arg6[%c0_30, %c0_31] : memref<8x8xf32, #tpu.memory_space<vmem>>, vector<8x8xf32>
    tpu.vector_store %arg6[%c0_30, %c0_31], %157 {strides = array<i32>} : memref<8x8xf32, #tpu.memory_space<vmem>>, vector<8x8xf32>,
    return
  }
}

</mosaic_0001>

<bundles_post_ra>
// kernel: tpu_custom_call.1
= control target key start
LH: loop header
LB: loop body
LE: loop exit
PB: predicated region body
PF: predicated region fallthrough
CT: control target
= control target key end

     0   :  { %v1363_v3 = vmov 0.0   ;;  %vm41_vm0 = vcmask 130048   ;;  %s1631_s0 = inlined_call_operand.vmem [shape: f32[64,16], index: 0, kind: input, shape index: {}]   ;;  %s1632_s1 = inlined_call_operand.vmem [shape: f32[16,128], index: 1, kind: input, shape index: {}]   ;;  %s1633_s2 = inlined_call_operand.vmem [shape: f32[32,128], index: 2, kind: input, shape index: {}]   ;;  %s1634_s3 = inlined_call_operand.vmem [shape: f32[1,128], index: 3, kind: input, shape index: {}]   ;;  %s1635_s4 = inlined_call_operand.vmem [shape: f32[32,8], index: 4, kind: input, shape index: {}]   ;;  %s1636_s5 = inlined_call_operand.vmem [shape: f32[1,8], index: 5, kind: input, shape index: {}]   ;;  %s1637_s6 = inlined_call_operand.hbm [shape: f32[8,8], index: 6, kind: output, shape index: {}]  }
   0x1   :  { %v33_v0 = vld [vmem:[%s1632_s1 + $0x8] sm:$0xff]  ;;  %v1409_v1 = vld [vmem:[%s1633_s2 + $0x18] sm:$0xff]  ;;  %v32_v2 = vld [vmem:[%s1632_s1] sm:$0xff]  ;;  %1173 = vmatprep.subr.mxu1 %v1363_v3 }
   0x2   :  { %1157 = vmatprep.subr.mxu0 %v33_v0  ;;  %v24_v4 = vld [vmem:[%s1631_s0] sm:$0xff]  ;;  %1174 = vmatpush3.msra.mxu1 %v1409_v1  ;;  %v1422_v5 = vld [vmem:[%s1633_s2 + $0x10] sm:$0xff]  ;;  %v25_v6 = vld [vmem:[%s1631_s0 + $0x8] sm:$0xff] }
   0x3   :  { %1158 = vmatpush3.msra.mxu0 %v33_v0 }
   0x4   :  { %11 = vsyncpa [#allocation3], 0  ;;  %1159 = vmatprep.subr.mxu0 %v32_v2  ;;  %1175 = vmatprep.subr.mxu1 %v1363_v3  ;;  %v1432_v7 = vld [vmem:[%s1633_s2 + $0x8] sm:$0xff]  ;;  %v1440_v8 = vld [vmem:[%s1633_s2] sm:$0xff]  ;;  %vm1364_vm1 = vmmov 0   ;;  %s1365_s13 = smov 64  }
   0x5   :  { %1160 = vmatpush3.msra.mxu0 %v32_v2  ;;  %1161 = vmatprep.mubr.msk.f32.mxu0 %vm41_vm0, %v24_v4  ;;  %v1471_v10 = vld [vmem:[%s1634_s3] ss:$0 sm:$0xff]  ;;  %s1366_s3 = smov 32   ;;  %vm175_vm2 = vcmask 261120   ;;  %v26_v44 = vld [vmem:[%s1631_s0 + $0x10] sm:$0xff]  ;;  %v27_v45 = vld [vmem:[%s1631_s0 + $0x18] sm:$0xff] }
   0x6   :  { %1176 = vmatpush3.msra.mxu1 %v1422_v5  ;;  %1162 = vmatmul.mubr.msk.f32.vlgmr.msra.gmra.mxu0 %vm41_vm0, %v25_v6  ;;  %v28_v46 = vld [vmem:[%s1631_s0 + $0x20] sm:$0xff]  ;;  %v29_v47 = vld [vmem:[%s1631_s0 + $0x28] sm:$0xff]  ;;  %v30_v48 = vld [vmem:[%s1631_s0 + $0x30] sm:$0xff]  ;;  %s1367_s10 = smov [#allocation2]   ;;  %vm1060_vm3 = vcmask 64512  }
   0x7   :  { %1177 = vmatprep.subr.mxu1 %v1363_v3  ;;  %1181 = vmatprep.mubr.msk.f32.mxu1 %vm1364_vm1, %v1363_v3  ;;  %v31_v49 = vld [vmem:[%s1631_s0 + $0x38] sm:$0xff] }
   0x8   :  { %1178 = vmatpush3.msra.mxu1 %v1432_v7  ;;  %1195 = vmatprep.subr.mxu0 %v1363_v3 }
   0x9   :  { %1179 = vmatprep.subr.mxu1 %v1363_v3  ;;  %1196 = vmatpush3.msra.mxu0 %v1409_v1 }
   0xa   :  { %1180 = vmatpush3.msra.mxu1 %v1440_v8  ;;  %1197 = vmatprep.subr.mxu0 %v1363_v3 }
   0xb   :  { %1182 = vmatmul.mubr.f32.vlgmr.msra.gmra.mxu1 %v1363_v3  ;;  %1184 = vmatprep.subr.mxu1 %v1363_v3 }
   0xc   :  { %1185 = vmatpush3.msra.mxu1 %v1409_v1  ;;  %1192 = vmatprep.mubr.msk.f32.mxu1 %vm1364_vm1, %v1363_v3 }
   0xd   :  { %1186 = vmatprep.subr.mxu1 %v1363_v3  ;;  %1198 = vmatpush3.msra.mxu0 %v1422_v5 }
   0xe   :  { %1187 = vmatpush3.msra.mxu1 %v1422_v5  ;;  %1199 = vmatprep.subr.mxu0 %v1363_v3 }
   0xf   :  { %1188 = vmatprep.subr.mxu1 %v1363_v3  ;;  %1200 = vmatpush3.msra.mxu0 %v1432_v7 }
  0x10   :  { %1189 = vmatpush3.msra.mxu1 %v1432_v7  ;;  %1201 = vmatprep.subr.mxu0 %v1363_v3 }
  0x11   :  { %1190 = vmatprep.subr.mxu1 %v1363_v3  ;;  %1202 = vmatpush3.msra.mxu0 %v1440_v8 }
  0x12   :  { %1191 = vmatpush3.msra.mxu1 %v1440_v8  ;;  %1217 = vmatprep.subr.mxu0 %v1363_v3 }
  0x13   :  { %1206 = vmatprep.subr.mxu1 %v1363_v3  ;;  %1164 = vmatprep.mubr.msk.f32.mxu0 %vm41_vm0, %v26_v44 }
  0x14   :  { %1165 = vmatmul.mubr.msk.f32.gmra.mxu0 %vm41_vm0, %v27_v45 }
  0x15   :  { %1167 = vmatprep.mubr.msk.f32.mxu0 %vm41_vm0, %v28_v46 }
  0x18   :  { %1168 = vmatmul.mubr.msk.f32.gmra.mxu0 %vm41_vm0, %v29_v47 }
  0x19   :  { %1170 = vmatprep.mubr.msk.f32.mxu0 %vm41_vm0, %v30_v48 }
  0x1c   :  { %1171 = vmatmul.mubr.msk.f32.gmra.mxu0 %vm41_vm0, %v31_v49 }
  0x1d   :  { %1203 = vmatprep.mubr.msk.f32.mxu0 %vm1364_vm1, %v1363_v3 }
  0xc6   :  { %v1163_v9 = vpop.f32.mrf.mxu0 }
  0xc7   :  { %v138_v30 = vadd.f32 %v1163_v9, %v1471_v10 }
  0xc8   :  { %v132_v11 = vpop.f32.mrf.mxu0 }
  0xc9   :  { %v133_v12 = vadd.f32 %v1471_v10, %v132_v11 }
  0xcb   :  { %v245_v13 = vpop.f32.mrf.mxu1 }
  0xcc   :  { %v249_v14 = vadd.f32 %v245_v13, %v133_v12 }
  0xcd   :  { %v1183_v15 = vpop.f32.mrf.mxu1 }
  0xce   :  { %1277 = vtanh.f32 %v249_v14  ;;  %v1085_v17 = vmul.f32 -1.442695, %v249_v14 }
  0xd0   :  { %1279 = vpow2.f32 %v1085_v17 }
  0xd4   :  { %v1166_v54 = vpop.f32.mrf.mxu0 }
  0xd6   :  { %v142_v55 = vpop.f32.mrf.mxu0 }
  0xd7   :  { %v143_v60 = vadd.f32 %v1471_v10, %v142_v55 }
  0xd8   :  { %v1531_v56 = vpop.f32.mrf.mxu0 }
  0xda   :  { %v1533_v57 = vpop.f32.mrf.mxu0 }
  0xdb   :  { %v1278_v16 = vpop.eup %1277 }
  0xdc   :  { %259 = vrot.lane.b32.xlu0 %v1278_v16, %s1365_s13  ;;  %v1535_v58 = vpop.f32.mrf.mxu0 }
  0xdd   :  { %v1280_v18 = vpop.eup %1279 }
  0xde   :  { %v253_v19 = vadd.f32 1.0, %v1280_v18  ;;  %v1537_v59 = vpop.f32.mrf.mxu0 }
  0xe0   :  { %1281 = vrcp.f32 %v253_v19 }
  0xed   :  { %v1282_v20 = vpop.eup %1281 }
  0xee   :  { %v257_v23 = vmul.f32 0.0, %v1282_v20 }
 0x14e   :  { %v260_v21 = vpop.permute.xlu0 %259 }
 0x14f   :  { %v262_v22 = vmul.f32 %v1282_v20, %v260_v21 }
 0x151   :  { %264 = vrot.lane.b32.xlu0 %v262_v22, %s1366_s3 }
 0x1c3   :  { %v265_v24 = vpop.permute.xlu0 %264 }
 0x1c4   :  { %v267_v25 = vadd.f32 %v265_v24, %v257_v23 }
 0x1c6   :  { %1283 = vtanh.f32 %v267_v25 }
 0x1d3   :  { %v1284_v26 = vpop.eup %1283 }
 0x1d4   :  { %270 = vrot.lane.b32.xlu1 %v1284_v26, %s1365_s13 }
 0x246   :  { %v271_v27 = vpop.permute.xlu1 %270 }
 0x247   :  { %v273_v28 = vmul.f32 %v1282_v20, %v271_v27  ;;  %v148_v20 = vadd.f32 %v1166_v54, %v1471_v10 }
 0x249   :  { %275 = vrot.lane.b32.xlu1 %v273_v28, %s1366_s3 }
 0x2bb   :  { %v276_v29 = vpop.permute.xlu1 %275 }
 0x2bc   :  { %1193 = vmatmul.mubr.msk.f32.vlgmr.msra.gmra.mxu1 %vm175_vm2, %v276_v29 }
 0x2bd   :  { %1207 = vmatpush3.msra.mxu1 %v1409_v1  ;;  %1214 = vmatprep.mubr.msk.f32.mxu1 %vm1364_vm1, %v1363_v3 }
 0x2be   :  { %1208 = vmatprep.subr.mxu1 %v1363_v3 }
 0x2bf   :  { %1209 = vmatpush3.msra.mxu1 %v1422_v5 }
 0x2c0   :  { %1210 = vmatprep.subr.mxu1 %v1363_v3 }
 0x2c1   :  { %1211 = vmatpush3.msra.mxu1 %v1432_v7 }
 0x2c2   :  { %1212 = vmatprep.subr.mxu1 %v1363_v3 }
 0x2c3   :  { %1213 = vmatpush3.msra.mxu1 %v1440_v8 }
 0x2c4   :  { %1228 = vmatprep.subr.mxu1 %v1363_v3 }
 0x37c   :  { %v345_v31 = vpop.f32.mrf.mxu1 }
 0x37d   :  { %v349_v32 = vadd.f32 %v345_v31, %v138_v30 }
 0x37e   :  { %v1194_v33 = vpop.f32.mrf.mxu1 }
 0x37f   :  { %1285 = vtanh.f32 %v349_v32  ;;  %v1087_v35 = vmul.f32 -1.442695, %v349_v32 }
 0x381   :  { %1287 = vpow2.f32 %v1087_v35 }
 0x38c   :  { %v1286_v34 = vpop.eup %1285 }
 0x38d   :  { %359 = vrot.lane.b32.xlu0 %v1286_v34, %s1365_s13 }
 0x38e   :  { %v1288_v36 = vpop.eup %1287 }
 0x38f   :  { %v353_v37 = vadd.f32 1.0, %v1288_v36 }
 0x391   :  { %1289 = vrcp.f32 %v353_v37 }
 0x39e   :  { %v1290_v38 = vpop.eup %1289 }
 0x39f   :  { %v357_v41 = vmul.f32 %v1290_v38, %v267_v25 }
 0x3ff   :  { %v360_v39 = vpop.permute.xlu0 %359 }
 0x400   :  { %v362_v40 = vmul.f32 %v1290_v38, %v360_v39 }
 0x402   :  { %364 = vrot.lane.b32.xlu1 %v362_v40, %s1366_s3 }
 0x474   :  { %v365_v42 = vpop.permute.xlu1 %364 }
 0x475   :  { %v367_v43 = vadd.f32 %v365_v42, %v357_v41 }
 0x477   :  { %1291 = vtanh.f32 %v367_v43 }
 0x484   :  { %v1292_v50 = vpop.eup %1291 }
 0x485   :  { %370 = vrot.lane.b32.xlu0 %v1292_v50, %s1365_s13 }
 0x4f7   :  { %v371_v51 = vpop.permute.xlu0 %370 }
 0x4f8   :  { %v373_v52 = vmul.f32 %v1290_v38, %v371_v51  ;;  %v153_v38 = vadd.f32 %v1471_v10, %v1533_v57  ;;  %v158_v57 = vadd.f32 %v1531_v56, %v1471_v10 }
 0x4fa   :  { %375 = vrot.lane.b32.xlu1 %v373_v52, %s1366_s3 }
 0x56c   :  { %v376_v53 = vpop.permute.xlu1 %375 }
 0x56d   :  { %1204 = vmatmul.mubr.msk.f32.vlgmr.msra.gmra.mxu0 %vm175_vm2, %v376_v53 }
 0x56e   :  { %1218 = vmatpush3.msra.mxu0 %v1409_v1  ;;  %1225 = vmatprep.mubr.msk.f32.mxu0 %vm1364_vm1, %v1363_v3 }
 0x56f   :  { %1219 = vmatprep.subr.mxu0 %v1363_v3 }
 0x570   :  { %1220 = vmatpush3.msra.mxu0 %v1422_v5 }
 0x571   :  { %1221 = vmatprep.subr.mxu0 %v1363_v3 }
 0x572   :  { %1222 = vmatpush3.msra.mxu0 %v1432_v7 }
 0x573   :  { %1223 = vmatprep.subr.mxu0 %v1363_v3 }
 0x574   :  { %1224 = vmatpush3.msra.mxu0 %v1440_v8 }
 0x575   :  { %1239 = vmatprep.subr.mxu0 %v1363_v3 }
 0x62d   :  { %v445_v61 = vpop.f32.mrf.mxu0 }
 0x62e   :  { %v449_v62 = vadd.f32 %v445_v61, %v143_v60 }
 0x62f   :  { %v1205_v63 = vpop.f32.mrf.mxu0 }
 0x630   :  { %1293 = vtanh.f32 %v449_v62  ;;  %v1089_v2 = vmul.f32 -1.442695, %v449_v62 }
 0x632   :  { %1295 = vpow2.f32 %v1089_v2 }
 0x63d   :  { %v1294_v0 = vpop.eup %1293 }
 0x63e   :  { %459 = vrot.lane.b32.xlu0 %v1294_v0, %s1365_s13 }
 0x63f   :  { %v1296_v4 = vpop.eup %1295 }
 0x640   :  { %v453_v6 = vadd.f32 1.0, %v1296_v4 }
 0x642   :  { %1297 = vrcp.f32 %v453_v6 }
 0x64f   :  { %v1298_v9 = vpop.eup %1297 }
 0x650   :  { %v457_v13 = vmul.f32 %v1298_v9, %v367_v43 }
 0x6b0   :  { %v460_v11 = vpop.permute.xlu0 %459 }
 0x6b1   :  { %v462_v12 = vmul.f32 %v1298_v9, %v460_v11 }
 0x6b3   :  { %464 = vrot.lane.b32.xlu1 %v462_v12, %s1366_s3 }
 0x725   :  { %v465_v14 = vpop.permute.xlu1 %464 }
 0x726   :  { %v467_v15 = vadd.f32 %v465_v14, %v457_v13  ;;  %v163_v14 = vadd.f32 %v1471_v10, %v1537_v59 }
 0x728   :  { %1299 = vtanh.f32 %v467_v15 }
 0x735   :  { %v1300_v16 = vpop.eup %1299 }
 0x736   :  { %470 = vrot.lane.b32.xlu0 %v1300_v16, %s1365_s13 }
 0x7a8   :  { %v471_v17 = vpop.permute.xlu0 %470 }
 0x7a9   :  { %v473_v18 = vmul.f32 %v1298_v9, %v471_v17 }
 0x7ab   :  { %475 = vrot.lane.b32.xlu1 %v473_v18, %s1366_s3 }
 0x81d   :  { %v476_v19 = vpop.permute.xlu1 %475 }
 0x81e   :  { %1215 = vmatmul.mubr.msk.f32.vlgmr.msra.gmra.mxu1 %vm175_vm2, %v476_v19 }
 0x81f   :  { %1229 = vmatpush3.msra.mxu1 %v1409_v1  ;;  %1236 = vmatprep.mubr.msk.f32.mxu1 %vm1364_vm1, %v1363_v3 }
 0x820   :  { %1230 = vmatprep.subr.mxu1 %v1363_v3 }
 0x821   :  { %1231 = vmatpush3.msra.mxu1 %v1422_v5 }
 0x822   :  { %1232 = vmatprep.subr.mxu1 %v1363_v3 }
 0x823   :  { %1233 = vmatpush3.msra.mxu1 %v1432_v7 }
 0x824   :  { %1234 = vmatprep.subr.mxu1 %v1363_v3 }
 0x825   :  { %1235 = vmatpush3.msra.mxu1 %v1440_v8 }
 0x826   :  { %1250 = vmatprep.subr.mxu1 %v1363_v3 }
 0x8de   :  { %v545_v21 = vpop.f32.mrf.mxu1 }
 0x8df   :  { %v549_v22 = vadd.f32 %v545_v21, %v148_v20 }
 0x8e0   :  { %v1216_v23 = vpop.f32.mrf.mxu1 }
 0x8e1   :  { %1301 = vtanh.f32 %v549_v22  ;;  %v1091_v25 = vmul.f32 -1.442695, %v549_v22 }
 0x8e3   :  { %1303 = vpow2.f32 %v1091_v25 }
 0x8ee   :  { %v1302_v24 = vpop.eup %1301 }
 0x8ef   :  { %559 = vrot.lane.b32.xlu0 %v1302_v24, %s1365_s13 }
 0x8f0   :  { %v1304_v26 = vpop.eup %1303 }
 0x8f1   :  { %v553_v27 = vadd.f32 1.0, %v1304_v26 }
 0x8f3   :  { %1305 = vrcp.f32 %v553_v27 }
 0x900   :  { %v1306_v28 = vpop.eup %1305 }
 0x901   :  { %v557_v31 = vmul.f32 %v1306_v28, %v467_v15 }
 0x961   :  { %v560_v29 = vpop.permute.xlu0 %559 }
 0x962   :  { %v562_v30 = vmul.f32 %v1306_v28, %v560_v29 }
 0x964   :  { %564 = vrot.lane.b32.xlu1 %v562_v30, %s1366_s3 }
 0x9d6   :  { %v565_v32 = vpop.permute.xlu1 %564 }
 0x9d7   :  { %v567_v33 = vadd.f32 %v565_v32, %v557_v31  ;;  %v168_v31 = vadd.f32 %v1535_v58, %v1471_v10  ;;  %v977_v58 = vld [vmem:[%s1635_s4 + $0x18] sm:$0xff] }
 0x9d9   :  { %1307 = vtanh.f32 %v567_v33 }
 0x9e6   :  { %v1308_v34 = vpop.eup %1307 }
 0x9e7   :  { %570 = vrot.lane.b32.xlu0 %v1308_v34, %s1365_s13 }
 0xa59   :  { %v571_v35 = vpop.permute.xlu0 %570 }
 0xa5a   :  { %v573_v36 = vmul.f32 %v1306_v28, %v571_v35 }
 0xa5c   :  { %575 = vrot.lane.b32.xlu1 %v573_v36, %s1366_s3 }
 0xace   :  { %v576_v37 = vpop.permute.xlu1 %575 }
 0xacf   :  { %1226 = vmatmul.mubr.msk.f32.vlgmr.msra.gmra.mxu0 %vm175_vm2, %v576_v37 }
 0xad0   :  { %1240 = vmatpush3.msra.mxu0 %v1409_v1  ;;  %1247 = vmatprep.mubr.msk.f32.mxu0 %vm1364_vm1, %v1363_v3 }
 0xad1   :  { %1241 = vmatprep.subr.mxu0 %v1363_v3 }
 0xad2   :  { %1242 = vmatpush3.msra.mxu0 %v1422_v5 }
 0xad3   :  { %1243 = vmatprep.subr.mxu0 %v1363_v3 }
 0xad4   :  { %1244 = vmatpush3.msra.mxu0 %v1432_v7 }
 0xad5   :  { %1245 = vmatprep.subr.mxu0 %v1363_v3 }
 0xad6   :  { %1246 = vmatpush3.msra.mxu0 %v1440_v8 }
 0xad7   :  { %1261 = vmatprep.subr.mxu0 %v1363_v3 }
 0xb8f   :  { %v645_v39 = vpop.f32.mrf.mxu0 }
 0xb90   :  { %v649_v40 = vadd.f32 %v645_v39, %v153_v38 }
 0xb91   :  { %v1227_v41 = vpop.f32.mrf.mxu0 }
 0xb92   :  { %1309 = vtanh.f32 %v649_v40  ;;  %v1093_v43 = vmul.f32 -1.442695, %v649_v40 }
 0xb94   :  { %1311 = vpow2.f32 %v1093_v43 }
 0xb9f   :  { %v1310_v42 = vpop.eup %1309 }
 0xba0   :  { %659 = vrot.lane.b32.xlu0 %v1310_v42, %s1365_s13 }
 0xba1   :  { %v1312_v44 = vpop.eup %1311 }
 0xba2   :  { %v653_v45 = vadd.f32 1.0, %v1312_v44  ;;  %v976_v44 = vld [vmem:[%s1635_s4 + $0x10] sm:$0xff] }
 0xba4   :  { %1313 = vrcp.f32 %v653_v45  ;;  %v975_v45 = vld [vmem:[%s1635_s4 + $0x8] sm:$0xff] }
 0xbb1   :  { %v1314_v46 = vpop.eup %1313 }
 0xbb2   :  { %v657_v49 = vmul.f32 %v1314_v46, %v567_v33 }
 0xc12   :  { %v660_v47 = vpop.permute.xlu0 %659 }
 0xc13   :  { %v662_v48 = vmul.f32 %v1314_v46, %v660_v47 }
 0xc15   :  { %664 = vrot.lane.b32.xlu1 %v662_v48, %s1366_s3 }
 0xc87   :  { %v665_v50 = vpop.permute.xlu1 %664 }
 0xc88   :  { %v667_v51 = vadd.f32 %v665_v50, %v657_v49 }
 0xc8a   :  { %1315 = vtanh.f32 %v667_v51 }
 0xc97   :  { %v1316_v52 = vpop.eup %1315 }
 0xc98   :  { %670 = vrot.lane.b32.xlu0 %v1316_v52, %s1365_s13 }
 0xd0a   :  { %v671_v53 = vpop.permute.xlu0 %670 }
 0xd0b   :  { %v673_v54 = vmul.f32 %v1314_v46, %v671_v53  ;;  %v974_v46 = vld [vmem:[%s1635_s4] sm:$0xff]  ;;  %s1068_s4 = sshll.u32 %s1367_s10, 4  ;;  %s1069_s4 = int_to_ptr.vmem [resolvable:$true] %s1068_s4 }
 0xd0c   :  { %s1341_s11 = scalar_lea.vmem %s1069_s4, 128  ;;  %p1346_p1 = scmp.lt.s32.totalorder %s1069_s4, %s1069_s4 }
 0xd0d   :  { %675 = vrot.lane.b32.xlu1 %v673_v54, %s1366_s3  ;;  %p1342_p0 = scmp.ne.s32.totalorder %s1069_s4, %s1341_s11  ;;  %p1347_p2 = scmp.lt.s32.totalorder %s1341_s11, %s1341_s11 }
 0xd0f   :  { %p1348_p3 = por %p1347_p2, %p1346_p1 }
 0xd11   :  { %p1349_p4 = pnand %p1348_p3, %p1342_p0 }
 0xd7f   :  { %v676_v55 = vpop.permute.xlu1 %675 }
 0xd80   :  { %1237 = vmatmul.mubr.msk.f32.vlgmr.msra.gmra.mxu1 %vm175_vm2, %v676_v55 }
 0xd81   :  { %1251 = vmatpush3.msra.mxu1 %v1409_v1  ;;  %1258 = vmatprep.mubr.msk.f32.mxu1 %vm1364_vm1, %v1363_v3 }
 0xd82   :  { %1252 = vmatprep.subr.mxu1 %v1363_v3 }
 0xd83   :  { %1253 = vmatpush3.msra.mxu1 %v1422_v5 }
 0xd84   :  { %1254 = vmatprep.subr.mxu1 %v1363_v3 }
 0xd85   :  { %1255 = vmatpush3.msra.mxu1 %v1432_v7 }
 0xd86   :  { %1256 = vmatprep.subr.mxu1 %v1363_v3 }
 0xd87   :  { %1257 = vmatpush3.msra.mxu1 %v1440_v8 }
 0xe40   :  { %v745_v60 = vpop.f32.mrf.mxu1 }
 0xe41   :  { %v749_v1 = vadd.f32 %v745_v60, %v158_v57 }
 0xe42   :  { %v1238_v61 = vpop.f32.mrf.mxu1 }
 0xe43   :  { %1317 = vtanh.f32 %v749_v1  ;;  %v1095_v63 = vmul.f32 -1.442695, %v749_v1 }
 0xe45   :  { %1319 = vpow2.f32 %v1095_v63 }
 0xe50   :  { %v1318_v62 = vpop.eup %1317 }
 0xe51   :  { %759 = vrot.lane.b32.xlu0 %v1318_v62, %s1365_s13 }
 0xe52   :  { %v1320_v5 = vpop.eup %1319 }
 0xe53   :  { %v753_v0 = vadd.f32 1.0, %v1320_v5 }
 0xe55   :  { %1321 = vrcp.f32 %v753_v0 }
 0xe62   :  { %v1322_v7 = vpop.eup %1321 }
 0xe63   :  { %v757_v8 = vmul.f32 %v1322_v7, %v667_v51  ;;  %v1100_v51 = vld [vmem:[%s1636_s5] ss:$0 sm:$0xff] }
 0xec3   :  { %v760_v2 = vpop.permute.xlu0 %759 }
 0xec4   :  { %v762_v4 = vmul.f32 %v1322_v7, %v760_v2 }
 0xec6   :  { %764 = vrot.lane.b32.xlu1 %v762_v4, %s1366_s3 }
 0xf38   :  { %v765_v6 = vpop.permute.xlu1 %764 }
 0xf39   :  { %v767_v56 = vadd.f32 %v765_v6, %v757_v8 }
 0xf3b   :  { %1323 = vtanh.f32 %v767_v56 }
 0xf48   :  { %v1324_v9 = vpop.eup %1323 }
 0xf49   :  { %770 = vrot.lane.b32.xlu0 %v1324_v9, %s1365_s13 }
 0xfbb   :  { %v771_v11 = vpop.permute.xlu0 %770 }
 0xfbc   :  { %v773_v12 = vmul.f32 %v1322_v7, %v771_v11 }
 0xfbe   :  { %775 = vrot.lane.b32.xlu1 %v773_v12, %s1366_s3 }
0x1030   :  { %v776_v13 = vpop.permute.xlu1 %775 }
0x1031   :  { %1248 = vmatmul.mubr.msk.f32.vlgmr.msra.gmra.mxu0 %vm175_vm2, %v776_v13 }
0x1032   :  { %1269 = vmatprep.mubr.msk.f32.mxu0 %vm1364_vm1, %v1363_v3  ;;  %1262 = vmatpush3.msra.mxu0 %v977_v58 }
0x1033   :  { %1263 = vmatprep.subr.mxu0 %v1363_v3 }
0x1034   :  { %1264 = vmatpush3.msra.mxu0 %v976_v44 }
0x1035   :  { %1265 = vmatprep.subr.mxu0 %v1363_v3 }
0x1036   :  { %1266 = vmatpush3.msra.mxu0 %v975_v45 }
0x1037   :  { %1267 = vmatprep.subr.mxu0 %v1363_v3 }
0x1038   :  { %1268 = vmatpush3.msra.mxu0 %v974_v46 }
0x10f1   :  { %v845_v15 = vpop.f32.mrf.mxu0 }
0x10f2   :  { %v849_v16 = vadd.f32 %v845_v15, %v163_v14 }
0x10f3   :  { %v1249_v17 = vpop.f32.mrf.mxu0 }
0x10f4   :  { %1325 = vtanh.f32 %v849_v16  ;;  %v1097_v19 = vmul.f32 -1.442695, %v849_v16 }
0x10f6   :  { %1327 = vpow2.f32 %v1097_v19 }
0x1101   :  { %v1326_v18 = vpop.eup %1325 }
0x1102   :  { %859 = vrot.lane.b32.xlu0 %v1326_v18, %s1365_s13 }
0x1103   :  { %v1328_v20 = vpop.eup %1327 }
0x1104   :  { %v853_v21 = vadd.f32 1.0, %v1328_v20 }
0x1106   :  { %1329 = vrcp.f32 %v853_v21 }
0x1113   :  { %v1330_v22 = vpop.eup %1329 }
0x1114   :  { %v857_v25 = vmul.f32 %v1330_v22, %v767_v56 }
0x1174   :  { %v860_v23 = vpop.permute.xlu0 %859 }
0x1175   :  { %v862_v24 = vmul.f32 %v1330_v22, %v860_v23 }
0x1177   :  { %864 = vrot.lane.b32.xlu1 %v862_v24, %s1366_s3 }
0x11e9   :  { %v865_v26 = vpop.permute.xlu1 %864 }
0x11ea   :  { %v867_v59 = vadd.f32 %v865_v26, %v857_v25 }
0x11ec   :  { %1331 = vtanh.f32 %v867_v59 }
0x11f9   :  { %v1332_v27 = vpop.eup %1331 }
0x11fa   :  { %870 = vrot.lane.b32.xlu0 %v1332_v27, %s1365_s13 }
0x126c   :  { %v871_v28 = vpop.permute.xlu0 %870 }
0x126d   :  { %v873_v29 = vmul.f32 %v1330_v22, %v871_v28 }
0x126f   :  { %875 = vrot.lane.b32.xlu1 %v873_v29, %s1366_s3 }
0x12e1   :  { %v876_v30 = vpop.permute.xlu1 %875 }
0x12e2   :  { %1259 = vmatmul.mubr.msk.f32.vlgmr.msra.gmra.mxu1 %vm175_vm2, %v876_v30 }
0x13a2   :  { %v945_v32 = vpop.f32.mrf.mxu1 }
0x13a3   :  { %v949_v33 = vadd.f32 %v945_v32, %v168_v31 }
0x13a4   :  { %v1260_v34 = vpop.f32.mrf.mxu1 }
0x13a5   :  { %1333 = vtanh.f32 %v949_v33  ;;  %v1099_v36 = vmul.f32 -1.442695, %v949_v33 }
0x13a7   :  { %1335 = vpow2.f32 %v1099_v36 }
0x13b2   :  { %v1334_v35 = vpop.eup %1333 }
0x13b3   :  { %959 = vrot.lane.b32.xlu0 %v1334_v35, %s1365_s13 }
0x13b4   :  { %v1336_v37 = vpop.eup %1335 }
0x13b5   :  { %v953_v38 = vadd.f32 1.0, %v1336_v37 }
0x13b7   :  { %1337 = vrcp.f32 %v953_v38 }
0x13c4   :  { %v1338_v39 = vpop.eup %1337 }
0x13c5   :  { %v957_v42 = vmul.f32 %v1338_v39, %v867_v59 }
0x1425   :  { %v960_v40 = vpop.permute.xlu0 %959 }
0x1426   :  { %v962_v41 = vmul.f32 %v1338_v39, %v960_v40 }
0x1428   :  { %964 = vrot.lane.b32.xlu1 %v962_v41, %s1366_s3 }
0x149a   :  { %v965_v43 = vpop.permute.xlu1 %964 }
0x149b   :  { %v967_v10 = vadd.f32 %v965_v43, %v957_v42 }
0x149d   :  { %1339 = vtanh.f32 %v967_v10 }
0x14aa   :  { %v1340_v47 = vpop.eup %1339 }
0x14ab   :  { %970 = vrot.lane.b32.xlu0 %v1340_v47, %s1365_s13 }
0x151d   :  { %v971_v48 = vpop.permute.xlu0 %970 }
0x151e   :  { %v973_v49 = vmul.f32 %v1338_v39, %v971_v48 }
0x1520   :  { %986 = vrot.lane.b32.xlu1 %v973_v49, %s1366_s3 }
0x1592   :  { %v987_v50 = vpop.permute.xlu1 %986 }
0x1593   :  { %1270 = vmatmul.mubr.msk.f32.vlgmr.msra.gmra.mxu0 %vm175_vm2, %v987_v50 }
0x1653   :  { %v1056_v52 = vpop.f32.mrf.mxu0 }
0x1654   :  { %v1057_v3 = vadd.f32 %v1100_v51, %v1056_v52 }
0x1655   :  { %v1271_v53 = vpop.f32.mrf.mxu0 }
0x1656   :  { %1061 = vst.msk [vmem:[#allocation2] sm:$0xff] %vm1060_vm3, %v1057_v3 }
0x1657   :  { %1352 = shalt.err (!%p1349_p4)
}
0x1658   :  { %1071 = dma.vmem_to_hbm [thread:$0]  %s1069_s4, 128, %s1637_s6, [#allocation3]  }
0x1659   :  { %1361 = dma.done.wait [#allocation3], 128  }
0x165a   :  { %1362 = vsyncadd [#allocation3], 4294967168 }
0x165b   :  { %1075 = vsyncpa [#allocation3], 1 }

</bundles_post_ra>
